<compile_context>
chip_gen: v7x
topology: tpu7x:2x2x1
jax: 0.10.0
libtpu: 0.0.40
codegen_flags: <defaults>
</compile_context>

<pallas_src>
import jax
import jax.numpy as jnp
import numpy as np
from jax.experimental import pallas as pl
from jax.experimental.pallas import tpu as pltpu

INPUT_SIZE = 28 * 28      # 784
CLASSES = 10
LAYERS = [64, 32]         # hidden layer sizes (len > 1 exercises linear_list)

SUBLANE = 8
OUT_PAD = 128             # lane-dense logits width (>= CLASSES)
MAX_TILE_B = 512          # batch tile when B is large (fits VMEM on v5e/v6e/v7x)


def _round_up(n, m):
    return (n + m - 1) // m * m


def mlp_kernel(x_ref, w0_ref, b0_ref, w1_ref, b1_ref, w2_ref, b2_ref, o_ref):
    # fc_input + ReLU  (cast x to bf16 in-kernel; accumulate in f32 on MXU)
    xb = x_ref[...].astype(jnp.bfloat16)
    h = jnp.dot(xb, w0_ref[...], preferred_element_type=jnp.float32)
    h = jnp.maximum(h + b0_ref[...], 0.0)
    # linear_list[0] + ReLU  (dropout disabled: dropout=-0.5 not in [0, 1])
    h = jnp.dot(h.astype(jnp.bfloat16), w1_ref[...],
                preferred_element_type=jnp.float32)
    h = jnp.maximum(h + b1_ref[...], 0.0)
    # fc_out (no activation); output columns padded to OUT_PAD (lane-dense)
    out = jnp.dot(h.astype(jnp.bfloat16), w2_ref[...],
                  preferred_element_type=jnp.float32)
    o_ref[...] = (out + b2_ref[...]).astype(o_ref.dtype)


def prepare_kernel_params(params):
    """One-time prep: transpose weights to [in, out], cast to bf16,
    pad the output projection to OUT_PAD lanes, biases as (1, N) f32."""
    (w0, b0), (w1, b1), (w2, b2) = params
    w0_t = jnp.asarray(w0.T, jnp.bfloat16)                       # (784, 64)
    w1_t = jnp.asarray(w1.T, jnp.bfloat16)                       # (64, 32)
    w2_t = jnp.asarray(w2.T, jnp.bfloat16)                       # (32, 10)
    w2_t = jnp.pad(w2_t, ((0, 0), (0, OUT_PAD - CLASSES)))       # (32, 128)
    b0_2d = b0.reshape(1, -1).astype(jnp.float32)                # (1, 64)
    b1_2d = b1.reshape(1, -1).astype(jnp.float32)                # (1, 32)
    b2_2d = jnp.pad(b2.astype(jnp.float32),
                    (0, OUT_PAD - CLASSES)).reshape(1, -1)       # (1, 128)
    return (w0_t, b0_2d, w1_t, b1_2d, w2_t, b2_2d)


def neural_net_list_forward(x, kparams):
    w0, b0, w1, b1, w2, b2 = kparams
    B, F = x.shape

    # Batch tiling: pad B to a multiple of the sublane width (8); grid over
    # batch tiles so large batches double-buffer x / out while the small
    # weights stay resident in VMEM across grid steps.
    tile_b = min(MAX_TILE_B, _round_up(B, SUBLANE))
    b_pad = _round_up(B, tile_b)

    x_p = x
    if b_pad != B:
        x_p = jnp.pad(x_p, ((0, b_pad - B), (0, 0)))

    grid = (b_pad // tile_b,)
    resident = lambda a: pl.BlockSpec(a.shape, lambda i: (0, 0))  # grid-invariant

    out = pl.pallas_call(
        mlp_kernel,
        out_shape=jax.ShapeDtypeStruct((b_pad, OUT_PAD), jnp.float32),
        grid=grid,
        in_specs=[
            pl.BlockSpec((tile_b, F), lambda i: (i, 0)),   # x tile per step
            resident(w0), resident(b0),
            resident(w1), resident(b1),
            resident(w2), resident(b2),
        ],
        out_specs=pl.BlockSpec((tile_b, OUT_PAD), lambda i: (i, 0)),
        compiler_params=pltpu.CompilerParams(
            dimension_semantics=("parallel",),
        ),
    )(x_p, w0, b0, w1, b1, w2, b2)

    return out[:B, :CLASSES]


def init_linear(key, in_f, out_f):
    # Deterministic PyTorch-style uniform(-1/sqrt(fan_in), 1/sqrt(fan_in)) init.
    kw, kb = jax.random.split(key)
    bound = 1.0 / np.sqrt(in_f)
    w = jax.random.uniform(kw, (out_f, in_f), jnp.float32, -bound, bound)
    b = jax.random.uniform(kb, (out_f,), jnp.float32, -bound, bound)
    return w, b


def reference_forward(x, kparams):
    # Same bf16-operand / f32-accumulate math as the kernel, in plain JAX.
    w0, b0, w1, b1, w2, b2 = kparams
    xb = x.astype(jnp.bfloat16)
    h = jnp.dot(xb, w0, preferred_element_type=jnp.float32) + b0
    h = jnp.maximum(h, 0.0)
    h = jnp.dot(h.astype(jnp.bfloat16), w1, preferred_element_type=jnp.float32) + b1
    h = jnp.maximum(h, 0.0)
    out = jnp.dot(h.astype(jnp.bfloat16), w2, preferred_element_type=jnp.float32) + b2
    return out[:, :CLASSES]


if __name__ == "__main__":
    key = jax.random.PRNGKey(0)
    kx, k0, k1, k2 = jax.random.split(key, 4)

    params = [
        init_linear(k0, INPUT_SIZE, LAYERS[0]),   # fc_input: 784 -> 64
        init_linear(k1, LAYERS[0], LAYERS[1]),    # linear_list[0]: 64 -> 32
        init_linear(k2, LAYERS[1], CLASSES),      # fc_out: 32 -> 10
    ]
    kparams = prepare_kernel_params(params)

    # Primary check: small batch (block == full array, no padding path).
    batch = 2
    x = jax.random.normal(kx, (batch, INPUT_SIZE), jnp.float32)
    out = jax.block_until_ready(neural_net_list_forward(x, kparams))
    ref = reference_forward(x, kparams)
    np.testing.assert_allclose(np.asarray(out), np.asarray(ref),
                               rtol=1e-3, atol=1e-3)

    # Secondary check: batch not a multiple of 8 exercises the pad/slice path.
    x2 = jax.random.normal(kx, (13, INPUT_SIZE), jnp.float32)
    out2 = jax.block_until_ready(neural_net_list_forward(x2, kparams))
    ref2 = reference_forward(x2, kparams)
    np.testing.assert_allclose(np.asarray(out2), np.asarray(ref2),
                               rtol=1e-3, atol=1e-3)

    print("KERNEL_OK")
</pallas_src>

<mosaic_0001>
module attributes {stable_mosaic.version = 11 : i64} {
  func.func @mlp_kernel(%arg0: i32, %arg1: memref<8x784xf32, #tpu.memory_space<vmem>>, %arg2: memref<784x64xbf16, #tpu.memory_space<vmem>>, %arg3: memref<1x64xf32, #tpu.memory_space<vmem>>, %arg4: memref<64x32xbf16, #tpu.memory_space<vmem>>, %arg5: memref<1x32xf32, #tpu.memory_space<vmem>>, %arg6: memref<32x128xbf16, #tpu.memory_space<vmem>>, %arg7: memref<1x128xf32, #tpu.memory_space<vmem>>, %arg8: memref<8x128xf32, #tpu.memory_space<vmem>>) attributes {dimension_semantics = [#tpu.dimension_semantics<parallel>], iteration_bounds = array<i64: 1>, scalar_prefetch = 0 : i64, scratch_operands = 0 : i64, tpu.core_type = #tpu.core_type<tc>, window_params = [{transform_indices = @transform_0, window_bounds = array<i64: 8, 784>}, {pipeline_mode = #tpu.pipeline_mode<synchronous>, transform_indices = @transform_1, window_bounds = array<i64: 784, 64>}, {pipeline_mode = #tpu.pipeline_mode<synchronous>, transform_indices = @transform_2, window_bounds = array<i64: 1, 64>}, {pipeline_mode = #tpu.pipeline_mode<synchronous>, transform_indices = @transform_3, window_bounds = array<i64: 64, 32>}, {pipeline_mode = #tpu.pipeline_mode<synchronous>, transform_indices = @transform_4, window_bounds = array<i64: 1, 32>}, {pipeline_mode = #tpu.pipeline_mode<synchronous>, transform_indices = @transform_5, window_bounds = array<i64: 32, 128>}, {pipeline_mode = #tpu.pipeline_mode<synchronous>, transform_indices = @transform_6, window_bounds = array<i64: 1, 128>}, {transform_indices = @transform_7, window_bounds = array<i64: 8, 128>}]} {
    %c0 = arith.constant 0 : index
    %c0_0 = arith.constant 0 : index
    %0 = vector.load %arg1[%c0, %c0_0] : memref<8x784xf32, #tpu.memory_space<vmem>>, vector<8x784xf32>
    %1 = arith.truncf %0 : vector<8x784xf32> to vector<8x784xbf16>
    %c0_1 = arith.constant 0 : index
    %c0_2 = arith.constant 0 : index
    %2 = vector.load %arg2[%c0_1, %c0_2] : memref<784x64xbf16, #tpu.memory_space<vmem>>, vector<784x64xbf16>
    %cst = arith.constant dense<0.000000e+00> : vector<8x64xf32>
    %3 = tpu.matmul %1, %2, %cst {dimension_numbers = #tpu.dot_dimension_numbers<[1], [0], [0], [1], [0, 0, 1, 1], [], []>} : vector<8x784xbf16>, vector<784x64xbf16>, vector<8x64xf32> -> vector<8x64xf32>
    %c0_3 = arith.constant 0 : index
    %c0_4 = arith.constant 0 : index
    %4 = vector.load %arg3[%c0_3, %c0_4] : memref<1x64xf32, #tpu.memory_space<vmem>>, vector<1x64xf32>
    %5 = vector.broadcast %4 : vector<1x64xf32> to vector<8x64xf32>
    %6 = arith.addf %3, %5 : vector<8x64xf32>
    %cst_5 = arith.constant 0.000000e+00 : f32
    %7 = vector.broadcast %cst_5 : f32 to vector<8x64xf32>
    %8 = arith.maximumf %6, %7 : vector<8x64xf32>
    %9 = arith.truncf %8 : vector<8x64xf32> to vector<8x64xbf16>
    %c0_6 = arith.constant 0 : index
    %c0_7 = arith.constant 0 : index
    %10 = vector.load %arg4[%c0_6, %c0_7] : memref<64x32xbf16, #tpu.memory_space<vmem>>, vector<64x32xbf16>
    %cst_8 = arith.constant dense<0.000000e+00> : vector<8x32xf32>
    %11 = tpu.matmul %9, %10, %cst_8 {dimension_numbers = #tpu.dot_dimension_numbers<[1], [0], [0], [1], [0, 0, 1, 1], [], []>} : vector<8x64xbf16>, vector<64x32xbf16>, vector<8x32xf32> -> vector<8x32xf32>
    %c0_9 = arith.constant 0 : index
    %c0_10 = arith.constant 0 : index
    %12 = vector.load %arg5[%c0_9, %c0_10] : memref<1x32xf32, #tpu.memory_space<vmem>>, vector<1x32xf32>
    %13 = vector.broadcast %12 : vector<1x32xf32> to vector<8x32xf32>
    %14 = arith.addf %11, %13 : vector<8x32xf32>
    %cst_11 = arith.constant 0.000000e+00 : f32
    %15 = vector.broadcast %cst_11 : f32 to vector<8x32xf32>
    %16 = arith.maximumf %14, %15 : vector<8x32xf32>
    %17 = arith.truncf %16 : vector<8x32xf32> to vector<8x32xbf16>
    %c0_12 = arith.constant 0 : index
    %c0_13 = arith.constant 0 : index
    %18 = vector.load %arg6[%c0_12, %c0_13] : memref<32x128xbf16, #tpu.memory_space<vmem>>, vector<32x128xbf16>
    %cst_14 = arith.constant dense<0.000000e+00> : vector<8x128xf32>
    %19 = tpu.matmul %17, %18, %cst_14 {dimension_numbers = #tpu.dot_dimension_numbers<[1], [0], [0], [1], [0, 0, 1, 1], [], []>} : vector<8x32xbf16>, vector<32x128xbf16>, vector<8x128xf32> -> vector<8x128xf32>
    %c0_15 = arith.constant 0 : index
    %c0_16 = arith.constant 0 : index
    %20 = vector.load %arg7[%c0_15, %c0_16] : memref<1x128xf32, #tpu.memory_space<vmem>>, vector<1x128xf32>
    %21 = vector.broadcast %20 : vector<1x128xf32> to vector<8x128xf32>
    %22 = arith.addf %19, %21 : vector<8x128xf32>
    %c0_17 = arith.constant 0 : index
    %c0_18 = arith.constant 0 : index
    %23 = vector.load %arg8[%c0_17, %c0_18] : memref<8x128xf32, #tpu.memory_space<vmem>>, vector<8x128xf32>
    tpu.vector_store %arg8[%c0_17, %c0_18], %22 {strides = array<i32>} : memref<8x128xf32, #tpu.memory_space<vmem>>, vector<8x128xf32>,
    return
  }
  func.func @transform_0(%arg0: i32) -> (i32, i32) {
    %c0_i32 = arith.constant 0 : i32
    %c0_i32_0 = arith.constant 0 : i32
    return %arg0, %c0_i32 : i32, i32
  }
  func.func @transform_1(%arg0: i32) -> (i32, i32) {
    %c0_i32 = arith.constant 0 : i32
    %c0_i32_0 = arith.constant 0 : i32
    %c0_i32_1 = arith.constant 0 : i32
    return %c0_i32, %c0_i32_0 : i32, i32
  }
  func.func @transform_2(%arg0: i32) -> (i32, i32) {
    %c0_i32 = arith.constant 0 : i32
    %c0_i32_0 = arith.constant 0 : i32
    %c0_i32_1 = arith.constant 0 : i32
    return %c0_i32, %c0_i32_0 : i32, i32
  }
  func.func @transform_3(%arg0: i32) -> (i32, i32) {
    %c0_i32 = arith.constant 0 : i32
    %c0_i32_0 = arith.constant 0 : i32
    %c0_i32_1 = arith.constant 0 : i32
    return %c0_i32, %c0_i32_0 : i32, i32
  }
  func.func @transform_4(%arg0: i32) -> (i32, i32) {
    %c0_i32 = arith.constant 0 : i32
    %c0_i32_0 = arith.constant 0 : i32
    %c0_i32_1 = arith.constant 0 : i32
    return %c0_i32, %c0_i32_0 : i32, i32
  }
  func.func @transform_5(%arg0: i32) -> (i32, i32) {
    %c0_i32 = arith.constant 0 : i32
    %c0_i32_0 = arith.constant 0 : i32
    %c0_i32_1 = arith.constant 0 : i32
    return %c0_i32, %c0_i32_0 : i32, i32
  }
  func.func @transform_6(%arg0: i32) -> (i32, i32) {
    %c0_i32 = arith.constant 0 : i32
    %c0_i32_0 = arith.constant 0 : i32
    %c0_i32_1 = arith.constant 0 : i32
    return %c0_i32, %c0_i32_0 : i32, i32
  }
  func.func @transform_7(%arg0: i32) -> (i32, i32) {
    %c0_i32 = arith.constant 0 : i32
    %c0_i32_0 = arith.constant 0 : i32
    return %arg0, %c0_i32 : i32, i32
  }
}

</mosaic_0001>

<bundles_post_ra>
// kernel: tpu_custom_call.1
= control target key start
LH: loop header
LB: loop body
LE: loop exit
PB: predicated region body
PF: predicated region fallthrough
CT: control target
= control target key end

     0   :  { %v1019_v44 = vmov 0.0   ;;  %vm1020_vm0 = vmmov 0   ;;  %vm441_vm1 = vcmask 130048   ;;  %s1282_s0 = inlined_call_operand.vmem [shape: f32[8,784], index: 0, kind: input, shape index: {}]   ;;  %s1283_s1 = inlined_call_operand.vmem [shape: bf16[784,64], index: 1, kind: input, shape index: {}]   ;;  %s1284_s2 = inlined_call_operand.vmem [shape: f32[1,64], index: 2, kind: input, shape index: {}]   ;;  %s1285_s3 = inlined_call_operand.vmem [shape: bf16[64,32], index: 3, kind: input, shape index: {}]   ;;  %s1286_s4 = inlined_call_operand.vmem [shape: f32[1,32], index: 4, kind: input, shape index: {}]   ;;  %s1287_s5 = inlined_call_operand.vmem [shape: bf16[32,128], index: 5, kind: input, shape index: {}]   ;;  %s1288_s6 = inlined_call_operand.vmem [shape: f32[1,128], index: 6, kind: input, shape index: {}]   ;;  %s1289_s7 = inlined_call_operand.hbm [shape: f32[8,128], index: 7, kind: output, shape index: {}]  }
   0x1   :  { %v940_v0 = vld [vmem:[%s1283_s1 + $0x40] sm:$0xff]   ;;  %v944_v4 = vld [vmem:[%s1283_s1 + $0x48] sm:$0xff]   ;;  %v948_v8 = vld [vmem:[%s1283_s1 + $0x50] sm:$0xff]  }
   0x2   :  { %v941_v1 = vld [vmem:[%s1283_s1] sm:$0xff]   ;;  %835 = vmatprep.subr.bf16.mxu0 %v940_v0  ;;  %v945_v5 = vld [vmem:[%s1283_s1 + $0x8] sm:$0xff]   ;;  %v949_v9 = vld [vmem:[%s1283_s1 + $0x10] sm:$0xff]  }
   0x3   :  { %v942_v2 = vld [vmem:[%s1283_s1 + $0xc0] sm:$0xff]   ;;  %836 = vmatpush3.bf16.msra.mxu0 %v941_v1  ;;  %v946_v6 = vld [vmem:[%s1283_s1 + $0xc8] sm:$0xff]   ;;  %v950_v10 = vld [vmem:[%s1283_s1 + $0xd0] sm:$0xff]  }
   0x4   :  { %v943_v3 = vld [vmem:[%s1283_s1 + $0x80] sm:$0xff]   ;;  %857 = vmatprep.subr.bf16.mxu1 %v942_v2  ;;  %837 = vmatprep.subr.bf16.mxu0 %v944_v4  ;;  %v947_v7 = vld [vmem:[%s1283_s1 + $0x88] sm:$0xff]   ;;  %v951_v11 = vld [vmem:[%s1283_s1 + $0x90] sm:$0xff]  }
   0x5   :  { %858 = vmatpush3.bf16.msra.mxu1 %v943_v3  ;;  %v952_v12 = vld [vmem:[%s1283_s1 + $0x58] sm:$0xff]   ;;  %v956_v16 = vld [vmem:[%s1283_s1 + $0x60] sm:$0xff]   ;;  %v960_v20 = vld [vmem:[%s1283_s1 + $0x68] sm:$0xff]  }
   0x6   :  { %859 = vmatprep.subr.bf16.mxu1 %v946_v6  ;;  %v953_v13 = vld [vmem:[%s1283_s1 + $0x18] sm:$0xff]   ;;  %v957_v17 = vld [vmem:[%s1283_s1 + $0x20] sm:$0xff]   ;;  %v961_v21 = vld [vmem:[%s1283_s1 + $0x28] sm:$0xff]  }
   0x7   :  { %838 = vmatpush3.bf16.msra.mxu0 %v945_v5  ;;  %v954_v14 = vld [vmem:[%s1283_s1 + $0xd8] sm:$0xff]   ;;  %v958_v18 = vld [vmem:[%s1283_s1 + $0xe0] sm:$0xff]   ;;  %v962_v22 = vld [vmem:[%s1283_s1 + $0xe8] sm:$0xff]  }
   0x8   :  { %839 = vmatprep.subr.bf16.mxu0 %v948_v8  ;;  %v955_v15 = vld [vmem:[%s1283_s1 + $0x98] sm:$0xff]   ;;  %v959_v19 = vld [vmem:[%s1283_s1 + $0xa0] sm:$0xff]   ;;  %v963_v23 = vld [vmem:[%s1283_s1 + $0xa8] sm:$0xff]  }
   0x9   :  { %860 = vmatpush3.bf16.msra.mxu1 %v947_v7  ;;  %v964_v24 = vld [vmem:[%s1283_s1 + $0x70] sm:$0xff]   ;;  %v968_v28 = vld [vmem:[%s1283_s1 + $0x78] sm:$0xff]   ;;  %v29_v31 = vld [vmem:[%s1282_s0 + $0x8] sm:$0xff] }
   0xa   :  { %861 = vmatprep.subr.bf16.mxu1 %v950_v10  ;;  %v965_v25 = vld [vmem:[%s1283_s1 + $0x30] sm:$0xff]   ;;  %v969_v29 = vld [vmem:[%s1283_s1 + $0x38] sm:$0xff]   ;;  %v36_v32 = vpack.c.bf16 %v29_v31, %v29_v31  ;;  %v28_v34 = vld [vmem:[%s1282_s0] sm:$0xff] }
   0xb   :  { %840 = vmatpush3.bf16.msra.mxu0 %v949_v9  ;;  %v966_v26 = vld [vmem:[%s1283_s1 + $0xf0] sm:$0xff]   ;;  %v970_v30 = vld [vmem:[%s1283_s1 + $0xf8] sm:$0xff]   ;;  %v35_v35 = vpack.c.bf16 %v28_v34, %v28_v34  ;;  %v972_v36 = vld [vmem:[%s1283_s1 + $0x140] sm:$0xff]  }
   0xc   :  { %841 = vmatprep.subr.bf16.mxu0 %v952_v12  ;;  %v967_v27 = vld [vmem:[%s1283_s1 + $0xb0] sm:$0xff]   ;;  %v971_v33 = vld [vmem:[%s1283_s1 + $0xb8] sm:$0xff]   ;;  %477 = vmatprep.mubr.bf16.mxu0 %v36_v32  ;;  %v973_v39 = vld [vmem:[%s1283_s1 + $0x100] sm:$0xff]  }
   0xd   :  { %862 = vmatpush3.bf16.msra.mxu1 %v951_v11  ;;  %v31_v37 = vld [vmem:[%s1282_s0 + $0x18] sm:$0xff]  ;;  %v30_v40 = vld [vmem:[%s1282_s0 + $0x10] sm:$0xff]  ;;  %v974_v42 = vld [vmem:[%s1283_s1 + $0x148] sm:$0xff]  }
   0xe   :  { %863 = vmatprep.subr.bf16.mxu1 %v954_v14  ;;  %v38_v38 = vpack.c.bf16 %v31_v37, %v31_v37  ;;  %v37_v41 = vpack.c.bf16 %v30_v40, %v30_v40  ;;  %v975_v43 = vld [vmem:[%s1283_s1 + $0x108] sm:$0xff]   ;;  %v976_v45 = vld [vmem:[%s1283_s1 + $0x150] sm:$0xff]   ;;  %v978_v47 = vld [vmem:[%s1283_s1 + $0x158] sm:$0xff]  }
   0xf   :  { %842 = vmatpush3.bf16.msra.mxu0 %v953_v13  ;;  %v977_v46 = vld [vmem:[%s1283_s1 + $0x110] sm:$0xff]   ;;  %v979_v48 = vld [vmem:[%s1283_s1 + $0x118] sm:$0xff]   ;;  %v980_v49 = vld [vmem:[%s1283_s1 + $0x160] sm:$0xff]  }
  0x10   :  { %843 = vmatprep.subr.bf16.mxu0 %v956_v16  ;;  %517 = vmatprep.mubr.bf16.mxu1 %v38_v38  ;;  %v981_v50 = vld [vmem:[%s1283_s1 + $0x120] sm:$0xff]   ;;  %v982_v51 = vld [vmem:[%s1283_s1 + $0x168] sm:$0xff]   ;;  %v984_v55 = vld [vmem:[%s1283_s1 + $0x170] sm:$0xff]  }
  0x11   :  { %864 = vmatpush3.bf16.msra.mxu1 %v955_v15  ;;  %v983_v52 = vld [vmem:[%s1283_s1 + $0x128] sm:$0xff]   ;;  %v988_v53 = vld [vmem:[%s1283_s1 + $0x180] sm:$0xff]   ;;  %v34_v57 = vld [vmem:[%s1282_s0 + $0x30] sm:$0xff] }
  0x12   :  { %865 = vmatprep.subr.bf16.mxu1 %v958_v18  ;;  %v33_v54 = vld [vmem:[%s1282_s0 + $0x28] sm:$0xff]  ;;  %v41_v58 = vpack.c.bf16 %v34_v57, %v34_v57 }
  0x13   :  { %844 = vmatpush3.bf16.msra.mxu0 %v957_v17  ;;  %v40_v56 = vpack.c.bf16 %v33_v54, %v33_v54 }
  0x14   :  { %845 = vmatprep.subr.bf16.mxu0 %v960_v20 }
  0x15   :  { %866 = vmatpush3.bf16.msra.mxu1 %v959_v19 }
  0x16   :  { %867 = vmatprep.subr.bf16.mxu1 %v962_v22 }
  0x17   :  { %846 = vmatpush3.bf16.msra.mxu0 %v961_v21 }
  0x18   :  { %847 = vmatprep.subr.bf16.mxu0 %v964_v24 }
  0x19   :  { %868 = vmatpush3.bf16.msra.mxu1 %v963_v23 }
  0x1a   :  { %869 = vmatprep.subr.bf16.mxu1 %v966_v26 }
  0x1b   :  { %848 = vmatpush3.bf16.msra.mxu0 %v965_v25 }
  0x1c   :  { %849 = vmatprep.subr.bf16.mxu0 %v968_v28 }
  0x1d   :  { %870 = vmatpush3.bf16.msra.mxu1 %v967_v27 }
  0x1e   :  { %871 = vmatprep.subr.bf16.mxu1 %v970_v30 }
  0x1f   :  { %850 = vmatpush3.bf16.msra.mxu0 %v969_v29 }
  0x20   :  { %879 = vmatprep.subr.bf16.mxu0 %v972_v36 }
  0x21   :  { %872 = vmatpush3.bf16.msra.mxu1 %v971_v33 }
  0x22   :  { %478 = vmatmul.mubr.bf16.vlgmr.msra.gmra.mrb[0].mxu0 %v35_v35  ;;  %911 = vmatprep.subr.bf16.mxu1 %v1019_v44 }
  0x23   :  { %880 = vmatpush3.bf16.msra.mxu0 %v973_v39  ;;  %557 = vmatprep.mubr.bf16.mxu0 %v40_v56 }
  0x24   :  { %518 = vmatmul.mubr.bf16.vlgmr.msra.gmra.mrb[0].mxu1 %v37_v41  ;;  %881 = vmatprep.subr.bf16.mxu0 %v974_v42 }
  0x25   :  { %913 = vmatprep.mubr.msk.bf16.mxu1 %vm1020_vm0, %v1019_v44  ;;  %912 = vmatpush3.bf16.msra.mxu1 %v988_v53 }
  0x26   :  { %917 = vmatprep.subr.bf16.mxu1 %v1019_v44 }
  0x27   :  { %882 = vmatpush3.bf16.msra.mxu0 %v975_v43 }
  0x28   :  { %883 = vmatprep.subr.bf16.mxu0 %v976_v45 }
  0x2b   :  { %884 = vmatpush3.bf16.msra.mxu0 %v977_v46 }
  0x2c   :  { %885 = vmatprep.subr.bf16.mxu0 %v978_v47  ;;  %914 = vmatmul.mubr.msk.bf16.vlgmr.msra.gmra.mrb[4].mxu1 %vm441_vm1, %v41_v58 }
  0x2f   :  { %886 = vmatpush3.bf16.msra.mxu0 %v979_v48 }
  0x30   :  { %887 = vmatprep.subr.bf16.mxu0 %v980_v49 }
  0x33   :  { %888 = vmatpush3.bf16.msra.mxu0 %v981_v50 }
  0x34   :  { %889 = vmatprep.subr.bf16.mxu0 %v982_v51 }
  0x35   :  { %12 = vsyncpa [#allocation3], 0  ;;  %v985_v59 = vld [vmem:[%s1283_s1 + $0x130] sm:$0xff]   ;;  %925 = vmatprep.mubr.msk.bf16.mxu1 %vm1020_vm0, %v1019_v44  ;;  %v986_v60 = vld [vmem:[%s1283_s1 + $0x178] sm:$0xff]   ;;  %vm646_vm2 = vcmask 523264   ;;  %vm715_vm3 = vcmask 261120  }
  0x36   :  { %v987_v61 = vld [vmem:[%s1283_s1 + $0x138] sm:$0xff]   ;;  %v32_v62 = vld [vmem:[%s1282_s0 + $0x20] sm:$0xff]  ;;  %v990_v1 = vld [vmem:[%s1285_s3 + $0x8] sm:$0xff]   ;;  %s1021_s12 = smov [#allocation2]  }
  0x37   :  { %890 = vmatpush3.bf16.msra.mxu0 %v983_v52  ;;  %v39_v63 = vpack.c.bf16 %v32_v62, %v32_v62  ;;  %v989_v0 = vld [vmem:[%s1285_s3] sm:$0xff]   ;;  %v991_v2 = vld [vmem:[%s1285_s3 + $0x10] sm:$0xff]   ;;  %v992_v3 = vld [vmem:[%s1285_s3 + $0x18] sm:$0xff]  }
  0x38   :  { %891 = vmatprep.subr.bf16.mxu0 %v984_v55  ;;  %918 = vmatpush3.bf16.msra.mxu1 %v989_v0  ;;  %v774_v5 = vld [vmem:[%s1284_s2] ss:$0 sm:$0xff]  ;;  %v994_v31 = vld [vmem:[%s1287_s5 + $0x8] sm:$0xff]  }
  0x39   :  { %919 = vmatprep.subr.bf16.mxu1 %v1019_v44  ;;  %v993_v29 = vld [vmem:[%s1287_s5] sm:$0xff]   ;;  %s766_s5 = sshll.u32 %s1021_s12, 4  ;;  %s767_s5 = int_to_ptr.vmem [resolvable:$true] %s766_s5 }
  0x3a   :  { %v825_v32 = vld [vmem:[%s1286_s4] ss:$0 sm:$0xff]  ;;  %s995_s4 = scalar_lea.vmem %s767_s5, 128  ;;  %p1000_p1 = scmp.lt.s32.totalorder %s767_s5, %s767_s5 }
  0x3b   :  { %892 = vmatpush3.bf16.msra.mxu0 %v985_v59  ;;  %v831_v40 = vld [vmem:[%s1288_s6] ss:$0 sm:$0xff]  ;;  %p996_p0 = scmp.ne.s32.totalorder %s767_s5, %s995_s4  ;;  %p1001_p2 = scmp.lt.s32.totalorder %s995_s4, %s995_s4 }
  0x3c   :  { %893 = vmatprep.subr.bf16.mxu0 %v986_v60  ;;  %920 = vmatpush3.bf16.msra.mxu1 %v990_v1 }
  0x3d   :  { %921 = vmatprep.subr.bf16.mxu1 %v1019_v44  ;;  %p1002_p3 = por %p1001_p2, %p1000_p1 }
  0x3f   :  { %894 = vmatpush3.bf16.msra.mxu0 %v987_v61  ;;  %p1003_p4 = pnand %p1002_p3, %p996_p0 }
  0x40   :  { %922 = vmatpush3.bf16.msra.mxu1 %v991_v2 }
  0x41   :  { %923 = vmatprep.subr.bf16.mxu1 %v1019_v44 }
  0x42   :  { %558 = vmatmul.mubr.bf16.vlgmr.msra.gmra.mrb[4].mxu0 %v39_v63 }
  0x44   :  { %924 = vmatpush3.bf16.msra.mxu1 %v992_v3 }
  0x45   :  { %929 = vmatprep.subr.bf16.mxu1 %v1019_v44 }
  0xf5   :  { %v851_v4 = vpop.f32.mrb[0].mxu0 }
  0xf6   :  { %v852_v6 = vpop.f32.mrb[1].mxu0 }
  0xf7   :  { %v853_v7 = vadd.f32 %v852_v6, %v851_v4  ;;  %v854_v8 = vpop.f32.mrb[2].mxu0  ;;  %v873_v9 = vpop.f32.mrb[0].mxu1 }
  0xf8   :  { %v855_v10 = vpop.f32.mrb[3].mxu0  ;;  %v874_v12 = vpop.f32.mrb[1].mxu1 }
  0xf9   :  { %v480_v11 = vadd.f32 %v853_v7, %v774_v5  ;;  %v875_v13 = vadd.f32 %v874_v12, %v873_v9  ;;  %v876_v14 = vpop.f32.mrb[2].mxu1 }
  0xfa   :  { %v877_v15 = vpop.f32.mrb[3].mxu1 }
  0xfb   :  { %v520_v16 = vadd.f32 %v875_v13, %v480_v11 }
  0xff   :  { %v599_v17 = vpop.f32.mrb[4].mxu1 }
 0x100   :  { %v915_v18 = vpop.f32.mrb[5].mxu1 }
 0x101   :  { %v602_v19 = vpop.f32.mrb[6].mxu1 }
 0x102   :  { %v916_v20 = vpop.f32.mrb[7].mxu1 }
 0x115   :  { %v895_v21 = vpop.f32.mrb[4].mxu0 }
 0x116   :  { %v896_v22 = vpop.f32.mrb[5].mxu0 }
 0x117   :  { %v897_v23 = vadd.f32 %v896_v22, %v895_v21  ;;  %v898_v24 = vpop.f32.mrb[6].mxu0 }
 0x118   :  { %v899_v25 = vpop.f32.mrb[7].mxu0 }
 0x119   :  { %v560_v26 = vadd.f32 %v897_v23, %v520_v16 }
 0x11b   :  { %v600_v27 = vadd.f32 %v599_v17, %v560_v26 }
 0x11d   :  { %v605_v28 = vmax.f32 %v600_v27, 0.0 }
 0x11f   :  { %v606_v30 = vpack.c.bf16 %v605_v28, %v605_v28 }
 0x121   :  { %926 = vmatmul.mubr.msk.bf16.vlgmr.msra.gmra.mrb[8].mxu1 %vm646_vm2, %v606_v30 }
 0x122   :  { %930 = vmatpush3.bf16.msra.mxu1 %v993_v29  ;;  %933 = vmatprep.mubr.msk.bf16.mxu1 %vm1020_vm0, %v1019_v44 }
 0x123   :  { %931 = vmatprep.subr.bf16.mxu1 %v1019_v44 }
 0x126   :  { %932 = vmatpush3.bf16.msra.mxu1 %v994_v31 }
 0x1f4   :  { %v684_v33 = vpop.f32.mrb[8].mxu1 }
 0x1f5   :  { %v685_v34 = vadd.f32 %v825_v32, %v684_v33  ;;  %v927_v35 = vpop.f32.mrb[9].mxu1 }
 0x1f6   :  { %v687_v36 = vpop.f32.mrb[10].mxu1 }
 0x1f7   :  { %v690_v37 = vmax.f32 %v685_v34, 0.0  ;;  %v928_v38 = vpop.f32.mrb[11].mxu1 }
 0x1f9   :  { %v691_v39 = vpack.c.bf16 %v690_v37, %v690_v37 }
 0x1fb   :  { %934 = vmatmul.mubr.msk.bf16.vlgmr.msra.gmra.mrb[12].mxu1 %vm715_vm3, %v691_v39 }
 0x2ce   :  { %v753_v41 = vpop.f32.mrb[12].mxu1 }
 0x2cf   :  { %v754_v42 = vadd.f32 %v831_v40, %v753_v41  ;;  %v935_v43 = vpop.f32.mrb[13].mxu1 }
 0x2d0   :  { %v756_v44 = vpop.f32.mrb[14].mxu1 }
 0x2d1   :  { %759 = vst [vmem:[#allocation2] sm:$0xff] %v754_v42  ;;  %v936_v45 = vpop.f32.mrb[15].mxu1 }
 0x2d2   :  { %1006 = shalt.err (!%p1003_p4)
}
 0x2d3   :  { %s1007_s6 = scalar_lea.hbm %s1289_s7, 128 }
 0x2d4   :  { %p1008_p5 = scmp.ne.s32.totalorder %s1289_s7, %s1007_s6  ;;  %p1011_p6 = scmp.lt.u32.totalorder %s1007_s6, %s1289_s7 }
 0x2d6   :  { %p1013_p7 = pnand %p1011_p6, %p1008_p5 }
 0x2d8   :  { %1016 = shalt.err (!%p1013_p7)
}
 0x2d9   :  { %769 = dma.vmem_to_hbm [thread:$0]  %s767_s5, 128, %s1289_s7, [#allocation3]  }
 0x2da   :  { %1017 = dma.done.wait [#allocation3], 128  }
 0x2db   :  { %1018 = vsyncadd [#allocation3], 4294967168 }
 0x2dc   :  { %773 = vsyncpa [#allocation3], 1 }

</bundles_post_ra>
